<compile_context>
chip_gen: v7x
topology: tpu7x:2x2x1
jax: 0.10.0
libtpu: 0.0.40
codegen_flags: <defaults>
</compile_context>

<pallas_src>
import jax
import jax.numpy as jnp
from jax.experimental import pallas as pl
from jax.experimental.pallas import tpu as pltpu


def net_kernel(
    gap_ref,      # (B, C)        f32  global-average-pooled image features
    meta_ref,     # (B, n_meta)   f32
    pk512_ref,    # (C+3, 512)    f32  rows [0:C]=wb, C=bb, C+1=folded fc@wo, C+2=sh1 (padded)
    w1_ref,       # (n_meta, 512) bf16 meta linear1 (BN1 folded, zero-padded 500->512)
    w2_ref,       # (512, 256)    bf16 meta linear2 (BN2 folded, zero-padded)
    pk256_ref,    # (3, 256)      f32  row0=sh2 (padded), row1=wo_meta (padded), row2[0]=bout
    out_ref,      # (B, 1)        f32
):
    c_in = pk512_ref.shape[0] - 3
    b = gap_ref.shape[0]

    bb   = pk512_ref[c_in:c_in + 1, :]          # (1, 512)
    wcnn = pk512_ref[c_in + 1:c_in + 2, :]      # (1, 512) folded fc@output weight
    sh1  = pk512_ref[c_in + 2:c_in + 3, :]      # (1, 512) folded bias+BN shift, layer 1

    # ---------- CNN branch (stand-in backbone head) ----------
    # K = C (=4) matmul done as C VPU broadcast FMAs: skips MXU fill/drain entirely.
    gap = gap_ref[...]                                          # (B, C) f32
    acc = jnp.broadcast_to(bb, (b, bb.shape[1]))                # (B, 512)
    for c in range(c_in):                                       # static tiny loop
        acc = acc + gap[:, c:c + 1] * pk512_ref[c:c + 1, :]
    feat = jnp.maximum(acc, 0.0)                                # (B, 512)

    # ---------- meta branch (Linear+BN+ReLU folded, Dropout = identity) ----------
    # bf16 activations x bf16 weights -> native MXU path, f32 accumulation.
    m = meta_ref[...].astype(jnp.bfloat16)
    h1 = jnp.maximum(
        jnp.dot(m, w1_ref[...], preferred_element_type=jnp.float32) + sh1, 0.0)   # (B, 512)

    sh2 = pk256_ref[0:1, :]
    wo_meta = pk256_ref[1:2, :]
    h2 = jnp.maximum(
        jnp.dot(h1.astype(jnp.bfloat16), w2_ref[...],
                preferred_element_type=jnp.float32) + sh2, 0.0)                    # (B, 256)

    # ---------- output head: no concat, no N=1 MXU matmul ----------
    out_cnn = jnp.sum(feat * wcnn, axis=-1, keepdims=True)       # (B, 1)
    out_meta = jnp.sum(h2 * wo_meta, axis=-1, keepdims=True)     # (B, 1)
    bout = pk256_ref[2:3, 0:1]                                   # (1, 1)
    out_ref[...] = (out_cnn + out_meta + bout).astype(out_ref.dtype)


def net_forward(x, meta, fp):
    """Whole Net forward in one grid-less Pallas call (everything fits VMEM)."""
    b = x.shape[0]
    # Stand-in backbone's spatial mean runs wrapper-side (exact): shrinks the image
    # DMA from B*C*H*W floats to B*C and avoids the half-padded C=4 sublane layout.
    gap = jnp.mean(x.astype(jnp.float32), axis=(2, 3))           # (B, C)
    args = (gap, meta.astype(jnp.float32),
            fp["pk512"], fp["w1"], fp["w2"], fp["pk256"])
    vmem = pl.BlockSpec(memory_space=pltpu.MemorySpace.VMEM)
    # NOTE(v7x): grid-less call runs on one TensorCore; add a batch grid axis with
    # dimension_semantics=("parallel",) if batch grows beyond toy scale.
    return pl.pallas_call(
        net_kernel,
        out_shape=jax.ShapeDtypeStruct((b, 1), jnp.float32),
        in_specs=[vmem] * len(args),
        out_specs=vmem,
    )(*args)


def make_params(key, c_in, n_meta):
    """Raw (unfolded) f32 parameters, mirroring the PyTorch module."""
    ks = jax.random.split(key, 8)

    def lin(k, fan_in, fan_out):
        scale = 1.0 / jnp.sqrt(jnp.float32(fan_in))
        kw, kb = jax.random.split(k)
        w = jax.random.uniform(kw, (fan_in, fan_out), jnp.float32, -scale, scale)
        b = jax.random.uniform(kb, (1, fan_out), jnp.float32, -scale, scale)
        return w, b

    wb, bb = lin(ks[0], c_in, 512)      # stand-in backbone head
    wfc, bfc = lin(ks[1], 512, 500)     # arch.fc (replaced: 512 -> 500)
    w1, b1 = lin(ks[2], n_meta, 500)    # meta[0]
    w2, b2 = lin(ks[3], 500, 250)       # meta[4]
    wo, bo = lin(ks[4], 750, 1)         # self.ouput

    eps = 1e-5

    def bn_fold(k, n):
        kg, kb_, km, kv = jax.random.split(k, 4)
        gamma = 1.0 + 0.1 * jax.random.normal(kg, (1, n), jnp.float32)
        beta = 0.1 * jax.random.normal(kb_, (1, n), jnp.float32)
        mean = 0.1 * jax.random.normal(km, (1, n), jnp.float32)
        var = jnp.abs(1.0 + 0.1 * jax.random.normal(kv, (1, n), jnp.float32))
        rstd = 1.0 / jnp.sqrt(var + eps)
        scale = gamma * rstd
        shift = beta - mean * scale
        return scale, shift

    sc1, sh1 = bn_fold(ks[5], 500)
    sc2, sh2 = bn_fold(ks[6], 250)

    return dict(
        wb=wb, bb=bb, wfc=wfc, bfc=bfc,
        w1=w1, b1=b1, sc1=sc1, sh1=sh1,
        w2=w2, b2=b2, sc2=sc2, sh2=sh2,
        wo=wo, bo=bo,
    )


def fold_params(p, weights_dtype=jnp.bfloat16):
    """Fold fc/BN/bias; zero-pad meta branch to 512/256 lanes; pack small vectors."""
    wo_cnn = p["wo"][:500, :]                  # (500, 1)  rows for the cnn half of the concat
    wo_meta = p["wo"][500:, :]                 # (250, 1)  rows for the meta half

    wcnn = (p["wfc"] @ wo_cnn).T               # (1, 512)  feat -> output (fc folded)
    b_out = p["bo"] + p["bfc"] @ wo_cnn        # (1, 1)

    w1f = p["w1"] * p["sc1"]                   # BN1 scale folded into weight
    sh1f = p["b1"] * p["sc1"] + p["sh1"]       # bias + BN1 shift
    w2f = p["w2"] * p["sc2"]
    sh2f = p["b2"] * p["sc2"] + p["sh2"]

    # Zero-pad to lane-aligned widths (exact: padded shifts are 0 so ReLU keeps the
    # padded columns at 0; padded w2 rows and wo_meta entries are 0 as well).
    w1p = jnp.pad(w1f, ((0, 0), (0, 512 - 500)))
    sh1p = jnp.pad(sh1f, ((0, 0), (0, 512 - 500)))
    w2p = jnp.pad(w2f, ((0, 512 - 500), (0, 256 - 250)))
    sh2p = jnp.pad(sh2f, ((0, 0), (0, 256 - 250)))
    wo_meta_p = jnp.pad(wo_meta.T, ((0, 0), (0, 256 - 250)))
    bout_row = jnp.pad(b_out, ((0, 0), (0, 256 - 1)))

    pk512 = jnp.concatenate([p["wb"], p["bb"], wcnn, sh1p], axis=0).astype(jnp.float32)
    pk256 = jnp.concatenate([sh2p, wo_meta_p, bout_row], axis=0).astype(jnp.float32)

    return dict(
        pk512=pk512,                           # (C+3, 512) f32
        w1=w1p.astype(weights_dtype),          # (n_meta, 512) bf16
        w2=w2p.astype(weights_dtype),          # (512, 256)    bf16
        pk256=pk256,                           # (3, 256)   f32
    )


def reference_folded(x, meta, fp):
    """Pure-JAX reference mirroring the kernel math (same folded/padded/bf16 params)."""
    c_in = fp["pk512"].shape[0] - 3
    gap = jnp.mean(x.astype(jnp.float32), axis=(2, 3))
    wb = fp["pk512"][:c_in]
    bb = fp["pk512"][c_in:c_in + 1]
    wcnn = fp["pk512"][c_in + 1:c_in + 2]
    sh1 = fp["pk512"][c_in + 2:c_in + 3]
    feat = jnp.maximum(gap @ wb + bb, 0.0)
    h1 = jnp.maximum(
        jnp.dot(meta.astype(jnp.bfloat16), fp["w1"],
                preferred_element_type=jnp.float32) + sh1, 0.0)
    sh2, wo_meta = fp["pk256"][0:1], fp["pk256"][1:2]
    h2 = jnp.maximum(
        jnp.dot(h1.astype(jnp.bfloat16), fp["w2"],
                preferred_element_type=jnp.float32) + sh2, 0.0)
    bout = fp["pk256"][2:3, 0:1]
    return (jnp.sum(feat * wcnn, axis=-1, keepdims=True)
            + jnp.sum(h2 * wo_meta, axis=-1, keepdims=True) + bout)


def reference_unfolded(x, meta, p):
    """Literal translation of the original module (eval mode), f32 weights."""
    gap = jnp.mean(x.astype(jnp.float32), axis=(2, 3))
    feat = jnp.maximum(gap @ p["wb"] + p["bb"], 0.0)
    cnn = feat @ p["wfc"] + p["bfc"]
    h1 = jnp.maximum((meta @ p["w1"] + p["b1"]) * p["sc1"] + p["sh1"], 0.0)
    h2 = jnp.maximum((h1 @ p["w2"] + p["b2"]) * p["sc2"] + p["sh2"], 0.0)
    feats = jnp.concatenate([cnn, h2], axis=1)
    return feats @ p["wo"] + p["bo"]


if __name__ == "__main__":
    B, C, H, W = 8, 4, 16, 16
    N_META = 16

    key = jax.random.PRNGKey(0)
    kx, km, kp = jax.random.split(key, 3)
    x = jax.random.normal(kx, (B, C, H, W), jnp.float32)
    meta = jax.random.normal(km, (B, N_META), jnp.float32)

    raw = make_params(kp, C, N_META)
    folded = fold_params(raw, weights_dtype=jnp.bfloat16)

    out = net_forward(x, meta, folded)
    out = jax.block_until_ready(out)
    assert out.shape == (B, 1), out.shape

    # Tight check: kernel vs pure-JAX reference on the identical folded/bf16 params.
    ref = reference_folded(x, meta, folded)
    assert jnp.allclose(out, ref, atol=5e-3, rtol=5e-3), (out, ref)

    # Loose check: folding + padding + bf16 quantization preserve module semantics.
    ref_full = reference_unfolded(x, meta, raw)
    assert jnp.allclose(out, ref_full, atol=1e-1, rtol=1e-1), (out, ref_full)

    print("KERNEL_OK")
</pallas_src>

<mosaic_0001>
module attributes {stable_mosaic.version = 11 : i64} {
  func.func @net_kernel(%arg0: memref<8x4xf32, #tpu.memory_space<vmem>>, %arg1: memref<8x16xf32, #tpu.memory_space<vmem>>, %arg2: memref<7x512xf32, #tpu.memory_space<vmem>>, %arg3: memref<16x512xbf16, #tpu.memory_space<vmem>>, %arg4: memref<512x256xbf16, #tpu.memory_space<vmem>>, %arg5: memref<3x256xf32, #tpu.memory_space<vmem>>, %arg6: memref<8x1xf32, #tpu.memory_space<vmem>>) attributes {dimension_semantics = [], scalar_prefetch = 0 : i64, scratch_operands = 0 : i64, tpu.core_type = #tpu.core_type<tc>} {
    %c4 = arith.constant 4 : index
    %c0 = arith.constant 0 : index
    %0 = vector.load %arg2[%c4, %c0] : memref<7x512xf32, #tpu.memory_space<vmem>>, vector<1x512xf32>
    %c5 = arith.constant 5 : index
    %c0_0 = arith.constant 0 : index
    %1 = vector.load %arg2[%c5, %c0_0] : memref<7x512xf32, #tpu.memory_space<vmem>>, vector<1x512xf32>
    %c6 = arith.constant 6 : index
    %c0_1 = arith.constant 0 : index
    %2 = vector.load %arg2[%c6, %c0_1] : memref<7x512xf32, #tpu.memory_space<vmem>>, vector<1x512xf32>
    %c0_2 = arith.constant 0 : index
    %c0_3 = arith.constant 0 : index
    %3 = vector.load %arg0[%c0_2, %c0_3] : memref<8x4xf32, #tpu.memory_space<vmem>>, vector<8x4xf32>
    %4 = vector.shape_cast %0 : vector<1x512xf32> to vector<1x512xf32>
    %5 = vector.broadcast %4 : vector<1x512xf32> to vector<8x512xf32>
    %6 = vector.extract_strided_slice %3 {offsets = [0, 0], sizes = [8, 1], strides = [1, 1]} : vector<8x4xf32> to vector<8x1xf32>
    %c0_4 = arith.constant 0 : index
    %c0_5 = arith.constant 0 : index
    %7 = vector.load %arg2[%c0_4, %c0_5] : memref<7x512xf32, #tpu.memory_space<vmem>>, vector<1x512xf32>
    %8 = vector.broadcast %6 : vector<8x1xf32> to vector<8x512xf32>
    %9 = vector.broadcast %7 : vector<1x512xf32> to vector<8x512xf32>
    %10 = arith.mulf %8, %9 : vector<8x512xf32>
    %11 = arith.addf %5, %10 : vector<8x512xf32>
    %12 = vector.extract_strided_slice %3 {offsets = [0, 1], sizes = [8, 1], strides = [1, 1]} : vector<8x4xf32> to vector<8x1xf32>
    %c1 = arith.constant 1 : index
    %c0_6 = arith.constant 0 : index
    %13 = vector.load %arg2[%c1, %c0_6] : memref<7x512xf32, #tpu.memory_space<vmem>>, vector<1x512xf32>
    %14 = vector.broadcast %12 : vector<8x1xf32> to vector<8x512xf32>
    %15 = vector.broadcast %13 : vector<1x512xf32> to vector<8x512xf32>
    %16 = arith.mulf %14, %15 : vector<8x512xf32>
    %17 = arith.addf %11, %16 : vector<8x512xf32>
    %18 = vector.extract_strided_slice %3 {offsets = [0, 2], sizes = [8, 1], strides = [1, 1]} : vector<8x4xf32> to vector<8x1xf32>
    %c2 = arith.constant 2 : index
    %c0_7 = arith.constant 0 : index
    %19 = vector.load %arg2[%c2, %c0_7] : memref<7x512xf32, #tpu.memory_space<vmem>>, vector<1x512xf32>
    %20 = vector.broadcast %18 : vector<8x1xf32> to vector<8x512xf32>
    %21 = vector.broadcast %19 : vector<1x512xf32> to vector<8x512xf32>
    %22 = arith.mulf %20, %21 : vector<8x512xf32>
    %23 = arith.addf %17, %22 : vector<8x512xf32>
    %24 = vector.extract_strided_slice %3 {offsets = [0, 3], sizes = [8, 1], strides = [1, 1]} : vector<8x4xf32> to vector<8x1xf32>
    %c3 = arith.constant 3 : index
    %c0_8 = arith.constant 0 : index
    %25 = vector.load %arg2[%c3, %c0_8] : memref<7x512xf32, #tpu.memory_space<vmem>>, vector<1x512xf32>
    %26 = vector.broadcast %24 : vector<8x1xf32> to vector<8x512xf32>
    %27 = vector.broadcast %25 : vector<1x512xf32> to vector<8x512xf32>
    %28 = arith.mulf %26, %27 : vector<8x512xf32>
    %29 = arith.addf %23, %28 : vector<8x512xf32>
    %cst = arith.constant 0.000000e+00 : f32
    %30 = vector.broadcast %cst : f32 to vector<8x512xf32>
    %31 = arith.maximumf %29, %30 : vector<8x512xf32>
    %c0_9 = arith.constant 0 : index
    %c0_10 = arith.constant 0 : index
    %32 = vector.load %arg1[%c0_9, %c0_10] : memref<8x16xf32, #tpu.memory_space<vmem>>, vector<8x16xf32>
    %33 = arith.truncf %32 : vector<8x16xf32> to vector<8x16xbf16>
    %c0_11 = arith.constant 0 : index
    %c0_12 = arith.constant 0 : index
    %34 = vector.load %arg3[%c0_11, %c0_12] : memref<16x512xbf16, #tpu.memory_space<vmem>>, vector<16x512xbf16>
    %cst_13 = arith.constant dense<0.000000e+00> : vector<8x512xf32>
    %35 = tpu.matmul %33, %34, %cst_13 {dimension_numbers = #tpu.dot_dimension_numbers<[1], [0], [0], [1], [0, 0, 1, 1], [], []>} : vector<8x16xbf16>, vector<16x512xbf16>, vector<8x512xf32> -> vector<8x512xf32>
    %36 = vector.broadcast %2 : vector<1x512xf32> to vector<8x512xf32>
    %37 = arith.addf %35, %36 : vector<8x512xf32>
    %cst_14 = arith.constant 0.000000e+00 : f32
    %38 = vector.broadcast %cst_14 : f32 to vector<8x512xf32>
    %39 = arith.maximumf %37, %38 : vector<8x512xf32>
    %c0_15 = arith.constant 0 : index
    %c0_16 = arith.constant 0 : index
    %40 = vector.load %arg5[%c0_15, %c0_16] : memref<3x256xf32, #tpu.memory_space<vmem>>, vector<1x256xf32>
    %c1_17 = arith.constant 1 : index
    %c0_18 = arith.constant 0 : index
    %41 = vector.load %arg5[%c1_17, %c0_18] : memref<3x256xf32, #tpu.memory_space<vmem>>, vector<1x256xf32>
    %42 = arith.truncf %39 : vector<8x512xf32> to vector<8x512xbf16>
    %c0_19 = arith.constant 0 : index
    %c0_20 = arith.constant 0 : index
    %43 = vector.load %arg4[%c0_19, %c0_20] : memref<512x256xbf16, #tpu.memory_space<vmem>>, vector<512x256xbf16>
    %cst_21 = arith.constant dense<0.000000e+00> : vector<8x256xf32>
    %44 = tpu.matmul %42, %43, %cst_21 {dimension_numbers = #tpu.dot_dimension_numbers<[1], [0], [0], [1], [0, 0, 1, 1], [], []>} : vector<8x512xbf16>, vector<512x256xbf16>, vector<8x256xf32> -> vector<8x256xf32>
    %45 = vector.broadcast %40 : vector<1x256xf32> to vector<8x256xf32>
    %46 = arith.addf %44, %45 : vector<8x256xf32>
    %cst_22 = arith.constant 0.000000e+00 : f32
    %47 = vector.broadcast %cst_22 : f32 to vector<8x256xf32>
    %48 = arith.maximumf %46, %47 : vector<8x256xf32>
    %49 = vector.broadcast %1 : vector<1x512xf32> to vector<8x512xf32>
    %50 = arith.mulf %31, %49 : vector<8x512xf32>
    %cst_23 = arith.constant dense<0.000000e+00> : vector<8xf32>
    %51 = vector.multi_reduction <add>, %50, %cst_23 [1] : vector<8x512xf32> to vector<8xf32>
    %52 = vector.shape_cast %51 : vector<8xf32> to vector<8x1xf32>
    %53 = vector.broadcast %41 : vector<1x256xf32> to vector<8x256xf32>
    %54 = arith.mulf %48, %53 : vector<8x256xf32>
    %cst_24 = arith.constant dense<0.000000e+00> : vector<8xf32>
    %55 = vector.multi_reduction <add>, %54, %cst_24 [1] : vector<8x256xf32> to vector<8xf32>
    %56 = vector.shape_cast %55 : vector<8xf32> to vector<8x1xf32>
    %c2_25 = arith.constant 2 : index
    %c0_26 = arith.constant 0 : index
    %57 = vector.load %arg5[%c2_25, %c0_26] : memref<3x256xf32, #tpu.memory_space<vmem>>, vector<1x1xf32>
    %58 = arith.addf %52, %56 : vector<8x1xf32>
    %59 = vector.broadcast %57 : vector<1x1xf32> to vector<8x1xf32>
    %60 = arith.addf %58, %59 : vector<8x1xf32>
    %c0_27 = arith.constant 0 : index
    %c0_28 = arith.constant 0 : index
    %61 = vector.load %arg6[%c0_27, %c0_28] : memref<8x1xf32, #tpu.memory_space<vmem>>, vector<8x1xf32>
    tpu.vector_store %arg6[%c0_27, %c0_28], %60 {strides = array<i32>} : memref<8x1xf32, #tpu.memory_space<vmem>>, vector<8x1xf32>,
    return
  }
}

</mosaic_0001>

<bundles_post_ra>
// kernel: tpu_custom_call.1
= control target key start
LH: loop header
LB: loop body
LE: loop exit
PB: predicated region body
PF: predicated region fallthrough
CT: control target
= control target key end

     0   :  { %11 = vsyncpa [#allocation3], 0  ;;  %s1323_s0 = inlined_call_operand.vmem [shape: f32[8,4], index: 0, kind: input, shape index: {}]   ;;  %s1324_s1 = inlined_call_operand.vmem [shape: f32[8,16], index: 1, kind: input, shape index: {}]   ;;  %s1325_s2 = inlined_call_operand.hbm [shape: f32[7,512], index: 2, kind: input, shape index: {}]   ;;  %s1326_s3 = inlined_call_operand.hbm [shape: bf16[16,512], index: 3, kind: input, shape index: {}]   ;;  %s1327_s4 = inlined_call_operand.hbm [shape: bf16[512,256], index: 4, kind: input, shape index: {}]   ;;  %s1328_s5 = inlined_call_operand.vmem [shape: f32[3,256], index: 5, kind: input, shape index: {}]   ;;  %s1329_s6 = inlined_call_operand.vmem [shape: f32[8,1], index: 6, kind: output, shape index: {}]  }
   0x1   :  { %12 = vsyncpa [#allocation5], 0  ;;  %s1183_s21 = smov [#allocation4]   ;;  %s1113_s25 = scalar_lea.hbm %s1326_s3, 512 }
   0x2   :  { %s32_s22 = sshll.u32 %s1183_s21, 4  ;;  %p1114_p0 = scmp.ne.s32.totalorder %s1326_s3, %s1113_s25  ;;  %s33_s22 = int_to_ptr.vmem [resolvable:$true] %s32_s22 }
   0x3   :  { %p1117_p1 = scmp.lt.u32.totalorder %s1113_s25, %s1326_s3 }
   0x5   :  { %p1119_p2 = pnand %p1117_p1, %p1114_p0 }
   0x7   :  { %1122 = shalt.err (!%p1119_p2)
}
   0x8   :  { %s1123_s30 = scalar_lea.vmem %s33_s22, 512  ;;  %p1128_p4 = scmp.lt.s32.totalorder %s33_s22, %s33_s22 }
   0x9   :  { %p1124_p3 = scmp.ne.s32.totalorder %s33_s22, %s1123_s30  ;;  %p1129_p5 = scmp.lt.s32.totalorder %s1123_s30, %s1123_s30 }
   0xb   :  { %p1130_p6 = por %p1129_p5, %p1128_p4 }
   0xd   :  { %p1131_p7 = pnand %p1130_p6, %p1124_p3 }
   0xf   :  { %1134 = shalt.err (!%p1131_p7)
}
  0x10   :  { %s1184_s7 = smov 256   ;;  %s1185_s8 = smov 16  }
  0x11   :  { %38 = dma.hbm_to_vmem [thread:$0]  %s1326_s3, 512, %s33_s22, [#allocation5], %s1184_s7, %s1184_s7, %s1185_s8  }
  0x12   :  { %s1186_s11 = smov [#allocation2]   ;;  %s1187_s13 = smov [#allocation6]  }
  0x13   :  { %s23_s12 = sshll.u32 %s1186_s11, 4  ;;  %s44_s14 = sshll.u32 %s1187_s13, 4  ;;  %s24_s12 = int_to_ptr.vmem [resolvable:$true] %s23_s12  ;;  %s45_s14 = int_to_ptr.vmem [resolvable:$true] %s44_s14 }
  0x14   :  { %s1135_s17 = scalar_lea.hbm %s1325_s2, 512 }
  0x15   :  { %p1136_p8 = scmp.ne.s32.totalorder %s1325_s2, %s1135_s17  ;;  %p1139_p9 = scmp.lt.u32.totalorder %s1135_s17, %s1325_s2 }
  0x17   :  { %p1141_p10 = pnand %p1139_p9, %p1136_p8 }
  0x19   :  { %1144 = shalt.err (!%p1141_p10)
}
  0x1a   :  { %s1145_s3 = scalar_lea.vmem %s24_s12, 512  ;;  %p1150_p12 = scmp.lt.s32.totalorder %s24_s12, %s24_s12 }
  0x1b   :  { %p1146_p11 = scmp.ne.s32.totalorder %s24_s12, %s1145_s3  ;;  %p1151_p13 = scmp.lt.s32.totalorder %s1145_s3, %s1145_s3 }
  0x1d   :  { %p1152_p0 = por %p1151_p13, %p1150_p12 }
  0x1f   :  { %p1153_p1 = pnand %p1152_p0, %p1146_p11 }
  0x21   :  { %1156 = shalt.err (!%p1153_p1)
}
  0x22   :  { %26 = dma.hbm_to_vmem [thread:$0]  %s1325_s2, 512, %s24_s12, [#allocation3]  }
  0x23   :  { %s1157_s26 = scalar_lea.hbm %s1327_s4, 8192 }
  0x24   :  { %p1158_p2 = scmp.ne.s32.totalorder %s1327_s4, %s1157_s26  ;;  %p1161_p3 = scmp.lt.u32.totalorder %s1157_s26, %s1327_s4 }
  0x26   :  { %p1163_p4 = pnand %p1161_p3, %p1158_p2 }
  0x28   :  { %1166 = shalt.err (!%p1163_p4)
}
  0x29   :  { %s1167_s7 = scalar_lea.vmem %s45_s14, 8192  ;;  %p1172_p6 = scmp.lt.s32.totalorder %s45_s14, %s45_s14 }
  0x2a   :  { %p1168_p5 = scmp.ne.s32.totalorder %s45_s14, %s1167_s7  ;;  %p1173_p7 = scmp.lt.s32.totalorder %s1167_s7, %s1167_s7 }
  0x2c   :  { %p1174_p8 = por %p1173_p7, %p1172_p6 }
  0x2e   :  { %p1175_p9 = pnand %p1174_p8, %p1168_p5 }
  0x30   :  { %1178 = shalt.err (!%p1175_p9)
}
  0x31   :  { %s1188_s2 = smov 128   ;;  %s1189_s8 = smov 8  }
  0x32   :  { %50 = dma.hbm_to_vmem [thread:$0]  %s1327_s4, 8192, %s45_s14, [#allocation5], %s1188_s2, %s1188_s2, %s1189_s8  }
  0x33   :  { %1179 = dma.done.wait [#allocation3], 512  }
  0x34   :  { %1180 = vsyncadd [#allocation3], 4294966784 }
  0x35   :  { %1181 = dma.done.wait [#allocation5], 8704  }
  0x36   :  { %1182 = vsyncadd [#allocation5], 4294958592  ;;  %v1190_v0 = vmov 0   ;;  %v1011_v1 = vld [vmem:[#allocation4 + $0x4] ss:$16 sps:$4 sm:$0xff]   ;;  %vm282_vm0 = vcmask 130048  }
  0x37   :  { %318 = vmatprep.mubr.bf16.mxu0 %v1190_v0  ;;  %359 = vmatprep.mubr.bf16.mxu1 %v1190_v0  ;;  %v1013_v2 = vld [vmem:[#allocation4 + $0xc] ss:$16 sps:$4 sm:$0xff]   ;;  %v1015_v3 = vld [vmem:[#allocation4] ss:$16 sps:$4 sm:$0xff]   ;;  %v1016_v4 = vld [vmem:[#allocation4 + $0x8] ss:$16 sps:$4 sm:$0xff]  }
  0x38   :  { %1006 = vset.pattern.permute.xlu0 %v1190_v0  ;;  %286 = vmatprep.subr.bf16.mxu0 %v1011_v1  ;;  %v235_v5 = vld [vmem:[%s1324_s1] sm:$0xff]  ;;  %v1017_v7 = vld [vmem:[#allocation6] ss:$8 sps:$4 sm:$0xff]   ;;  %v1019_v8 = vld [vmem:[#allocation6 + $0x4] ss:$8 sps:$4 sm:$0xff]   ;;  %vm911_vm1 = vcmask 7168  }
  0x39   :  { %327 = vmatprep.subr.bf16.mxu1 %v1013_v2  ;;  %v236_v6 = vpack.c.bf16 %v235_v5, %v235_v5  ;;  %287 = vmatpush1.bf16.msra.mxu0 %v1015_v3  ;;  %v1020_v9 = vld [vmem:[#allocation6 + $0x100] ss:$8 sps:$4 sm:$0xff]   ;;  %v1022_v10 = vld [vmem:[#allocation6 + $0x104] ss:$8 sps:$4 sm:$0xff]   ;;  %v1025_v11 = vld [vmem:[#allocation6 + $0x14] ss:$8 sps:$4 sm:$0xff]  }
  0x3a   :  { %328 = vmatpush1.bf16.msra.mxu1 %v1016_v4  ;;  %v1023_v12 = vld [vmem:[#allocation6 + $0x10] ss:$8 sps:$4 sm:$0xff]   ;;  %815 = vmatprep.subr.bf16.mxu0 %v1022_v10  ;;  %v1028_v13 = vld [vmem:[#allocation6 + $0x114] ss:$8 sps:$4 sm:$0xff]   ;;  %v1031_v15 = vld [vmem:[#allocation6 + $0x24] ss:$8 sps:$4 sm:$0xff]  }
  0x3b   :  { %774 = vmatprep.subr.bf16.mxu1 %v1019_v8  ;;  %v1026_v14 = vld [vmem:[#allocation6 + $0x110] ss:$8 sps:$4 sm:$0xff]   ;;  %v1034_v16 = vld [vmem:[#allocation6 + $0x124] ss:$8 sps:$4 sm:$0xff]   ;;  %v1029_v17 = vld [vmem:[#allocation6 + $0x20] ss:$8 sps:$4 sm:$0xff]  }
  0x3c   :  { %923 = vmatmul.mubr.msk.bf16.vlgmr.msra.gmra.mrb[0].mxu0 %vm282_vm0, %v236_v6  ;;  %v1032_v18 = vld [vmem:[#allocation6 + $0x120] ss:$8 sps:$4 sm:$0xff]   ;;  %v1037_v19 = vld [vmem:[#allocation6 + $0x34] ss:$8 sps:$4 sm:$0xff]   ;;  %v1035_v21 = vld [vmem:[#allocation6 + $0x30] ss:$8 sps:$4 sm:$0xff]  }
  0x3d   :  { %924 = vmatmul.mubr.msk.bf16.vlgmr.msra.gmra.mrb[0].mxu1 %vm282_vm0, %v236_v6  ;;  %816 = vmatpush1.bf16.msra.mxu0 %v1020_v9  ;;  %v1040_v20 = vld [vmem:[#allocation6 + $0x134] ss:$8 sps:$4 sm:$0xff]   ;;  %v1038_v22 = vld [vmem:[#allocation6 + $0x130] ss:$8 sps:$4 sm:$0xff]   ;;  %v1043_v23 = vld [vmem:[#allocation6 + $0x44] ss:$8 sps:$4 sm:$0xff]  }
  0x3e   :  { %775 = vmatpush1.bf16.msra.mxu1 %v1017_v7  ;;  %817 = vmatprep.subr.bf16.mxu0 %v1028_v13  ;;  %v1046_v24 = vld [vmem:[#allocation6 + $0x144] ss:$8 sps:$4 sm:$0xff]   ;;  %v1041_v25 = vld [vmem:[#allocation6 + $0x40] ss:$8 sps:$4 sm:$0xff]   ;;  %v1049_v27 = vld [vmem:[#allocation6 + $0x54] ss:$8 sps:$4 sm:$0xff]  }
  0x3f   :  { %776 = vmatprep.subr.bf16.mxu1 %v1025_v11  ;;  %v1044_v26 = vld [vmem:[#allocation6 + $0x140] ss:$8 sps:$4 sm:$0xff]   ;;  %v1052_v28 = vld [vmem:[#allocation6 + $0x154] ss:$8 sps:$4 sm:$0xff]   ;;  %v1047_v29 = vld [vmem:[#allocation6 + $0x50] ss:$8 sps:$4 sm:$0xff]   ;;  %v71_v11 = vlaneseq }
  0x40   :  { %v1050_v30 = vld [vmem:[#allocation6 + $0x150] ss:$8 sps:$4 sm:$0xff]   ;;  %v1055_v31 = vld [vmem:[#allocation6 + $0x64] ss:$8 sps:$4 sm:$0xff]   ;;  %v1053_v33 = vld [vmem:[#allocation6 + $0x60] ss:$8 sps:$4 sm:$0xff]  }
  0x41   :  { %818 = vmatpush1.bf16.msra.mxu0 %v1026_v14  ;;  %v1058_v32 = vld [vmem:[#allocation6 + $0x164] ss:$8 sps:$4 sm:$0xff]   ;;  %v1056_v34 = vld [vmem:[#allocation6 + $0x160] ss:$8 sps:$4 sm:$0xff]   ;;  %v1061_v35 = vld [vmem:[#allocation6 + $0x74] ss:$8 sps:$4 sm:$0xff]  }
  0x42   :  { %777 = vmatpush1.bf16.msra.mxu1 %v1023_v12  ;;  %819 = vmatprep.subr.bf16.mxu0 %v1034_v16  ;;  %v1064_v36 = vld [vmem:[#allocation6 + $0x174] ss:$8 sps:$4 sm:$0xff]   ;;  %v1059_v37 = vld [vmem:[#allocation6 + $0x70] ss:$8 sps:$4 sm:$0xff]   ;;  %v1067_v39 = vld [vmem:[#allocation6 + $0x84] ss:$8 sps:$4 sm:$0xff]  }
  0x43   :  { %778 = vmatprep.subr.bf16.mxu1 %v1031_v15  ;;  %v1062_v38 = vld [vmem:[#allocation6 + $0x170] ss:$8 sps:$4 sm:$0xff]   ;;  %v1070_v40 = vld [vmem:[#allocation6 + $0x184] ss:$8 sps:$4 sm:$0xff]   ;;  %v1065_v41 = vld [vmem:[#allocation6 + $0x80] ss:$8 sps:$4 sm:$0xff]  }
  0x44   :  { %v1068_v42 = vld [vmem:[#allocation6 + $0x180] ss:$8 sps:$4 sm:$0xff]   ;;  %v1073_v43 = vld [vmem:[#allocation6 + $0x94] ss:$8 sps:$4 sm:$0xff]   ;;  %v1071_v44 = vld [vmem:[#allocation6 + $0x90] ss:$8 sps:$4 sm:$0xff]  }
  0x45   :  { %820 = vmatpush1.bf16.msra.mxu0 %v1032_v18  ;;  %v1076_v45 = vld [vmem:[#allocation6 + $0x194] ss:$8 sps:$4 sm:$0xff]   ;;  %v1074_v46 = vld [vmem:[#allocation6 + $0x190] ss:$8 sps:$4 sm:$0xff]   ;;  %v1079_v47 = vld [vmem:[#allocation6 + $0xa4] ss:$8 sps:$4 sm:$0xff]  }
  0x46   :  { %779 = vmatpush1.bf16.msra.mxu1 %v1029_v17  ;;  %821 = vmatprep.subr.bf16.mxu0 %v1040_v20  ;;  %v1082_v48 = vld [vmem:[#allocation6 + $0x1a4] ss:$8 sps:$4 sm:$0xff]   ;;  %v1077_v49 = vld [vmem:[#allocation6 + $0xa0] ss:$8 sps:$4 sm:$0xff]   ;;  %v1085_v51 = vld [vmem:[#allocation6 + $0xb4] ss:$8 sps:$4 sm:$0xff]  }
  0x47   :  { %780 = vmatprep.subr.bf16.mxu1 %v1037_v19  ;;  %v1080_v50 = vld [vmem:[#allocation6 + $0x1a0] ss:$8 sps:$4 sm:$0xff]   ;;  %v1088_v52 = vld [vmem:[#allocation6 + $0x1b4] ss:$8 sps:$4 sm:$0xff]   ;;  %v1083_v53 = vld [vmem:[#allocation6 + $0xb0] ss:$8 sps:$4 sm:$0xff]  }
  0x48   :  { %v1086_v54 = vld [vmem:[#allocation6 + $0x1b0] ss:$8 sps:$4 sm:$0xff]   ;;  %v1091_v55 = vld [vmem:[#allocation6 + $0xc4] ss:$8 sps:$4 sm:$0xff]   ;;  %v1089_v57 = vld [vmem:[#allocation6 + $0xc0] ss:$8 sps:$4 sm:$0xff]  }
  0x49   :  { %822 = vmatpush1.bf16.msra.mxu0 %v1038_v22  ;;  %v1094_v56 = vld [vmem:[#allocation6 + $0x1c4] ss:$8 sps:$4 sm:$0xff]   ;;  %v1092_v58 = vld [vmem:[#allocation6 + $0x1c0] ss:$8 sps:$4 sm:$0xff]   ;;  %v1097_v59 = vld [vmem:[#allocation6 + $0xd4] ss:$8 sps:$4 sm:$0xff]  }
  0x4a   :  { %781 = vmatpush1.bf16.msra.mxu1 %v1035_v21  ;;  %823 = vmatprep.subr.bf16.mxu0 %v1046_v24  ;;  %v1100_v60 = vld [vmem:[#allocation6 + $0x1d4] ss:$8 sps:$4 sm:$0xff]   ;;  %v1095_v61 = vld [vmem:[#allocation6 + $0xd0] ss:$8 sps:$4 sm:$0xff]   ;;  %v1103_v63 = vld [vmem:[#allocation6 + $0xe4] ss:$8 sps:$4 sm:$0xff]  }
  0x4b   :  { %782 = vmatprep.subr.bf16.mxu1 %v1043_v23  ;;  %v1098_v62 = vld [vmem:[#allocation6 + $0x1d0] ss:$8 sps:$4 sm:$0xff]   ;;  %v1106_v0 = vld [vmem:[#allocation6 + $0x1e4] ss:$8 sps:$4 sm:$0xff]   ;;  %v1101_v1 = vld [vmem:[#allocation6 + $0xe0] ss:$8 sps:$4 sm:$0xff]  }
  0x4c   :  { %v1104_v2 = vld [vmem:[#allocation6 + $0x1e0] ss:$8 sps:$4 sm:$0xff]   ;;  %v1109_v3 = vld [vmem:[#allocation6 + $0xf4] ss:$8 sps:$4 sm:$0xff]   ;;  %v1107_v5 = vld [vmem:[#allocation6 + $0xf0] ss:$8 sps:$4 sm:$0xff]  }
  0x4d   :  { %824 = vmatpush1.bf16.msra.mxu0 %v1044_v26  ;;  %v1112_v4 = vld [vmem:[#allocation6 + $0x1f4] ss:$8 sps:$4 sm:$0xff]   ;;  %v1110_v6 = vld [vmem:[#allocation6 + $0x1f0] ss:$8 sps:$4 sm:$0xff]   ;;  %v1191_v8 = vmov 2   ;;  %v1192_v9 = vmov 1  }
  0x4e   :  { %783 = vmatpush1.bf16.msra.mxu1 %v1041_v25  ;;  %825 = vmatprep.subr.bf16.mxu0 %v1052_v28  ;;  %v69_v7 = vld [vmem:[%s1323_s0] sm:$0xff]  ;;  %v1193_v10 = vmov 3   ;;  %v72_v12 = vshrl.u32 %v71_v11, 7 }
  0x4f   :  { %784 = vmatprep.subr.bf16.mxu1 %v1049_v27  ;;  %94 = vperm.xlu0 %1006, %v69_v7   ;;  %v68_v15 = vld [vmem:[#allocation2 + $0x6] ss:$8 sm:$0xf] }
  0x50   :  { %1008 = vset.pattern.permute.xlu1 %v1191_v8  ;;  %v1271_v13 = vsub.s32 0, %v72_v12  ;;  %v1273_v14 = vsub.s32 2, %v72_v12  ;;  %v1275_v16 = vsub.s32 1, %v72_v12  ;;  %v1277_v17 = vsub.s32 3, %v72_v12 }
  0x51   :  { %826 = vmatpush1.bf16.msra.mxu0 %v1050_v30  ;;  %164 = vperm.xlu1 %1008, %v69_v7  }
  0x52   :  { %785 = vmatpush1.bf16.msra.mxu1 %v1047_v29  ;;  %827 = vmatprep.subr.bf16.mxu0 %v1058_v32  ;;  %v245_v18 = vrot.slane %v68_v15, %v1271_v13  ;;  %v253_v19 = vrot.slane %v68_v15, %v1273_v14  ;;  %v249_v20 = vrot.slane %v68_v15, %v1275_v16 }
  0x53   :  { %786 = vmatprep.subr.bf16.mxu1 %v1055_v31  ;;  %1007 = vset.pattern.permute.xlu0 %v1192_v9  ;;  %v257_v21 = vrot.slane %v68_v15, %v1277_v17 }
  0x54   :  { %129 = vperm.xlu0 %1007, %v69_v7  }
  0x55   :  { %828 = vmatpush1.bf16.msra.mxu0 %v1056_v34  ;;  %1009 = vset.pattern.permute.xlu1 %v1193_v10 }
  0x56   :  { %787 = vmatpush1.bf16.msra.mxu1 %v1053_v33  ;;  %829 = vmatprep.subr.bf16.mxu0 %v1064_v36 }
  0x57   :  { %788 = vmatprep.subr.bf16.mxu1 %v1061_v35  ;;  %199 = vperm.xlu1 %1009, %v69_v7  }
  0x58   :  { %1010 = vset.pattern.permute.xlu0 %v1193_v10 }
  0x59   :  { %830 = vmatpush1.bf16.msra.mxu0 %v1062_v38 }
  0x5a   :  { %789 = vmatpush1.bf16.msra.mxu1 %v1059_v37  ;;  %831 = vmatprep.subr.bf16.mxu0 %v1070_v40 }
  0x5b   :  { %790 = vmatprep.subr.bf16.mxu1 %v1067_v39 }
  0x5d   :  { %832 = vmatpush1.bf16.msra.mxu0 %v1068_v42  ;;  %v91_v42 = vld [vmem:[#allocation2] ss:$8 sm:$0xf] }
  0x5e   :  { %791 = vmatpush1.bf16.msra.mxu1 %v1065_v41  ;;  %833 = vmatprep.subr.bf16.mxu0 %v1076_v45  ;;  %v105_v45 = vrot.slane %v91_v42, %v1275_v16 }
  0x5f   :  { %792 = vmatprep.subr.bf16.mxu1 %v1073_v43 }
  0x61   :  { %834 = vmatpush1.bf16.msra.mxu0 %v1074_v46  ;;  %v64_v46 = vld [vmem:[#allocation2 + $0x4] ss:$8 sm:$0xf] }
  0x62   :  { %793 = vmatpush1.bf16.msra.mxu1 %v1071_v44  ;;  %835 = vmatprep.subr.bf16.mxu0 %v1082_v48  ;;  %v101_v44 = vrot.slane %v91_v42, %v1271_v13  ;;  %v109_v48 = vrot.slane %v91_v42, %v1273_v14 }
  0x63   :  { %794 = vmatprep.subr.bf16.mxu1 %v1079_v47  ;;  %v127_v47 = vld [vmem:[#allocation2 + $0x1] ss:$8 sm:$0xf] }
  0x65   :  { %836 = vmatpush1.bf16.msra.mxu0 %v1080_v50 }
  0x66   :  { %795 = vmatpush1.bf16.msra.mxu1 %v1077_v49  ;;  %837 = vmatprep.subr.bf16.mxu0 %v1088_v52  ;;  %v74_v49 = vrot.slane %v64_v46, %v1271_v13  ;;  %v136_v52 = vrot.slane %v127_v47, %v1271_v13 }
  0x67   :  { %796 = vmatprep.subr.bf16.mxu1 %v1085_v51  ;;  %v162_v51 = vld [vmem:[#allocation2 + $0x2] ss:$8 sm:$0xf] }
  0x69   :  { %838 = vmatpush1.bf16.msra.mxu0 %v1086_v54 }
  0x6a   :  { %797 = vmatpush1.bf16.msra.mxu1 %v1083_v53  ;;  %839 = vmatprep.subr.bf16.mxu0 %v1094_v56  ;;  %v78_v53 = vrot.slane %v64_v46, %v1275_v16 }
  0x6b   :  { %798 = vmatprep.subr.bf16.mxu1 %v1091_v55  ;;  %v140_v55 = vrot.slane %v127_v47, %v1275_v16 }
  0x6d   :  { %840 = vmatpush1.bf16.msra.mxu0 %v1092_v58  ;;  %v171_v58 = vrot.slane %v162_v51, %v1271_v13 }
  0x6e   :  { %799 = vmatpush1.bf16.msra.mxu1 %v1089_v57  ;;  %841 = vmatprep.subr.bf16.mxu0 %v1100_v60  ;;  %v82_v57 = vrot.slane %v64_v46, %v1273_v14 }
  0x6f   :  { %800 = vmatprep.subr.bf16.mxu1 %v1097_v59 }
  0x71   :  { %842 = vmatpush1.bf16.msra.mxu0 %v1098_v62  ;;  %v144_v62 = vrot.slane %v127_v47, %v1273_v14 }
  0x72   :  { %801 = vmatpush1.bf16.msra.mxu1 %v1095_v61  ;;  %843 = vmatprep.subr.bf16.mxu0 %v1106_v0  ;;  %v197_v0 = vld [vmem:[#allocation2 + $0x3] ss:$8 sm:$0xf] }
  0x73   :  { %802 = vmatprep.subr.bf16.mxu1 %v1103_v63  ;;  %v210_v15 = vrot.slane %v197_v0, %v1275_v16 }
  0x75   :  { %844 = vmatpush1.bf16.msra.mxu0 %v1104_v2  ;;  %v175_v2 = vrot.slane %v162_v51, %v1275_v16 }
  0x76   :  { %803 = vmatpush1.bf16.msra.mxu1 %v1101_v1  ;;  %845 = vmatprep.subr.bf16.mxu0 %v1112_v4  ;;  %v113_v4 = vrot.slane %v91_v42, %v1277_v17 }
  0x77   :  { %804 = vmatprep.subr.bf16.mxu1 %v1109_v3 }
  0x79   :  { %846 = vmatpush1.bf16.msra.mxu0 %v1110_v6  ;;  %v206_v6 = vrot.slane %v197_v0, %v1271_v13 }
  0x7a   :  { %805 = vmatpush1.bf16.msra.mxu1 %v1107_v5  ;;  %v179_v5 = vrot.slane %v162_v51, %v1273_v14 }
  0xce   :  { %v95_v43 = vpop.permute.xlu0 %94 }
  0xcf   :  { %v118_v50 = vmul.f32 %v101_v44, %v95_v43  ;;  %v119_v54 = vmul.f32 %v105_v45, %v95_v43  ;;  %v120_v60 = vmul.f32 %v109_v48, %v95_v43 }
  0xd0   :  { %v165_v59 = vpop.permute.xlu1 %164 }
  0xd1   :  { %v122_v61 = vadd.f32 %v118_v50, %v74_v49  ;;  %v123_v1 = vadd.f32 %v119_v54, %v78_v53  ;;  %v124_v7 = vadd.f32 %v120_v60, %v82_v57  ;;  %v188_v8 = vmul.f32 %v171_v58, %v165_v59 }
  0xd2   :  { %v189_v11 = vmul.f32 %v175_v2, %v165_v59 }
  0xd3   :  { %v130_v56 = vpop.permute.xlu0 %129 }
  0xd4   :  { %v153_v63 = vmul.f32 %v136_v52, %v130_v56  ;;  %v154_v3 = vmul.f32 %v140_v55, %v130_v56  ;;  %v155_v9 = vmul.f32 %v144_v62, %v130_v56  ;;  %v925_v62 = vld [vmem:[%s1328_s5 + $0x1] ss:$4 sm:$0x3] }
  0xd6   :  { %v157_v10 = vadd.f32 %v153_v63, %v122_v61  ;;  %v158_v12 = vadd.f32 %v154_v3, %v123_v1 }
 0x10f   :  { %v320_v22 = vpop.f32.mrb[0].mxu0 }
 0x110   :  { %v361_v23 = vpop.f32.mrb[0].mxu1  ;;  %v321_v24 = vadd.f32 %v320_v22, %v245_v18  ;;  %v322_v26 = vpop.f32.mrb[1].mxu0  ;;  %v214_v22 = vrot.slane %v197_v0, %v1273_v14 }
 0x111   :  { %v362_v25 = vadd.f32 %v361_v23, %v253_v19  ;;  %v363_v27 = vpop.f32.mrb[1].mxu1  ;;  %v323_v28 = vadd.f32 %v322_v26, %v249_v20  ;;  %v324_v30 = vpop.f32.mrb[2].mxu0  ;;  %v86_v19 = vrot.slane %v64_v46, %v1277_v17  ;;  %v121_v20 = vmul.f32 %v113_v4, %v95_v43  ;;  %v66_v43 = vld [vmem:[#allocation2 + $0x5] ss:$8 sm:$0xf] }
 0x112   :  { %v364_v29 = vadd.f32 %v363_v27, %v257_v21  ;;  %v365_v31 = vpop.f32.mrb[2].mxu1  ;;  %v368_v32 = vmax.f32 %v321_v24, 0.0  ;;  %v325_v34 = vpop.f32.mrb[3].mxu0  ;;  %v148_v21 = vrot.slane %v127_v47, %v1277_v17  ;;  %v190_v23 = vmul.f32 %v179_v5, %v165_v59 }
 0x113   :  { %v370_v33 = vmax.f32 %v362_v25, 0.0  ;;  %v366_v35 = vpop.f32.mrb[3].mxu1  ;;  %v369_v36 = vmax.f32 %v323_v28, 0.0  ;;  %v200_v18 = vpop.permute.xlu1 %199  ;;  %v159_v24 = vadd.f32 %v155_v9, %v124_v7  ;;  %v192_v25 = vadd.f32 %v188_v8, %v157_v10 }
 0x114   :  { %v371_v37 = vmax.f32 %v364_v29, 0.0  ;;  %v375_v41 = vpack.c.bf16 %v368_v32, %v368_v32  ;;  %v223_v26 = vmul.f32 %v206_v6, %v200_v18  ;;  %v193_v27 = vadd.f32 %v189_v11, %v158_v12 }
 0x115   :  { %v377_v38 = vpack.c.bf16 %v370_v33, %v370_v33  ;;  %v376_v39 = vpack.c.bf16 %v369_v36, %v369_v36  ;;  %v224_v28 = vmul.f32 %v210_v15, %v200_v18  ;;  %v125_v29 = vadd.f32 %v121_v20, %v86_v19 }
 0x116   :  { %v378_v40 = vpack.c.bf16 %v371_v37, %v371_v37  ;;  %v183_v30 = vrot.slane %v162_v51, %v1277_v17  ;;  %v156_v31 = vmul.f32 %v148_v21, %v130_v56  ;;  %v218_v32 = vrot.slane %v197_v0, %v1277_v17  ;;  %v990_v21 = vld [vmem:[%s1328_s5 + $0x2] ss:$0 sm:$0xff] }
 0x117   :  { %806 = vmatprep.mubr.bf16.mxu1 %v376_v39  ;;  %v194_v33 = vadd.f32 %v190_v23, %v159_v24  ;;  %v225_v34 = vmul.f32 %v214_v22, %v200_v18  ;;  %v227_v35 = vadd.f32 %v223_v26, %v192_v25  ;;  %v228_v36 = vadd.f32 %v224_v28, %v193_v27 }
 0x118   :  { %847 = vmatprep.mubr.bf16.mxu0 %v378_v40  ;;  %807 = vmatmul.mubr.bf16.vlgmr.msra.gmra.mrb[4].mxu1 %v375_v41  ;;  %v191_v37 = vmul.f32 %v183_v30, %v165_v59  ;;  %v226_v39 = vmul.f32 %v218_v32, %v200_v18  ;;  %v862_v45 = vrot.slane %v66_v43, %v1271_v13  ;;  %v372_v59 = vld [vmem:[%s1328_s5] ss:$4 sm:$0x3] }
 0x119   :  { %848 = vmatmul.mubr.bf16.vlgmr.msra.gmra.mrb[4].mxu0 %v377_v38  ;;  %v160_v38 = vadd.f32 %v156_v31, %v125_v29  ;;  %v229_v40 = vadd.f32 %v225_v34, %v194_v33  ;;  %v231_v41 = vmax.f32 %v227_v35, 0.0  ;;  %v232_v42 = vmax.f32 %v228_v36, 0.0 }
 0x11a   :  { %v866_v46 = vrot.slane %v66_v43, %v1275_v16  ;;  %v870_v49 = vrot.slane %v66_v43, %v1273_v14  ;;  %v874_v53 = vrot.slane %v66_v43, %v1277_v17  ;;  %v447_v60 = vrot.slane %v372_v59, %v1271_v13 }
 0x11b   :  { %v195_v44 = vadd.f32 %v191_v37, %v160_v38  ;;  %v233_v48 = vmax.f32 %v229_v40, 0.0  ;;  %v879_v50 = vmul.f32 %v862_v45, %v231_v41  ;;  %v451_v61 = vrot.slane %v372_v59, %v1275_v16 }
 0x11c   :  { %v880_v51 = vmul.f32 %v866_v46, %v232_v42  ;;  %v892_v6 = vrot.slane %v925_v62, %v1271_v13  ;;  %v896_v10 = vrot.slane %v925_v62, %v1275_v16 }
 0x11d   :  { %v230_v47 = vadd.f32 %v226_v39, %v195_v44  ;;  %v881_v54 = vmul.f32 %v870_v49, %v233_v48 }
 0x11e   :  { %v883_v55 = vadd.f32 %v880_v51, %v879_v50 }
 0x11f   :  { %v234_v52 = vmax.f32 %v230_v47, 0.0 }
 0x120   :  { %v884_v57 = vadd.f32 %v883_v55, %v881_v54 }
 0x121   :  { %v882_v56 = vmul.f32 %v874_v53, %v234_v52 }
 0x123   :  { %v885_v58 = vadd.f32 %v884_v57, %v882_v56 }
 0x125   :  { %886 = vadd.xlane.f32.xlu1 %v885_v58 }
 0x1b2   :  { %v887_v20 = vpop.xlane.xlu1 %886 }
 0x1eb   :  { %v808_v14 = vpop.f32.mrb[4].mxu1 }
 0x1ec   :  { %v849_v17 = vpop.f32.mrb[4].mxu0  ;;  %v809_v63 = vadd.f32 %v808_v14, %v447_v60  ;;  %v810_v0 = vpop.f32.mrb[5].mxu1 }
 0x1ed   :  { %v851_v1 = vpop.f32.mrb[5].mxu0  ;;  %v811_v2 = vadd.f32 %v810_v0, %v451_v61  ;;  %v812_v3 = vpop.f32.mrb[6].mxu1 }
 0x1ee   :  { %v853_v4 = vpop.f32.mrb[6].mxu0  ;;  %v850_v5 = vadd.f32 %v849_v17, %v809_v63  ;;  %v813_v7 = vpop.f32.mrb[7].mxu1 }
 0x1ef   :  { %v854_v8 = vpop.f32.mrb[7].mxu0  ;;  %v852_v9 = vadd.f32 %v851_v1, %v811_v2 }
 0x1f0   :  { %v856_v11 = vmax.f32 %v850_v5, 0.0 }
 0x1f1   :  { %v857_v12 = vmax.f32 %v852_v9, 0.0 }
 0x1f2   :  { %v899_v15 = vmul.f32 %v892_v6, %v856_v11 }
 0x1f3   :  { %v900_v18 = vmul.f32 %v896_v10, %v857_v12 }
 0x1f5   :  { %v901_v19 = vadd.f32 %v900_v18, %v899_v15 }
 0x1f7   :  { %902 = vadd.xlane.f32.xlu0 %v901_v19 }
 0x284   :  { %v903_v22 = vpop.xlane.xlu0 %902 }
 0x285   :  { %v905_v23 = vadd.f32 %v903_v22, %v887_v20 }
 0x287   :  { %v910_v13 = vadd.f32 %v990_v21, %v905_v23 }
 0x289   :  { %912 = vst.msk [vmem:[%s1329_s6] sm:$0xff] %vm911_vm1, %v910_v13 }
 0x28a   :  { %917 = vsyncpa [#allocation3], 1 }
 0x28b   :  { %918 = vsyncpa [#allocation5], 1 }

</bundles_post_ra>
